<compile_context>
chip_gen: v7x
topology: tpu7x:2x2x1
jax: 0.10.0
libtpu: 0.0.40
codegen_flags: <defaults>
</compile_context>

<pallas_src>
import jax
import jax.numpy as jnp
from jax.experimental import pallas as pl
from jax.experimental.pallas import tpu as pltpu

_SUBLANE = 8
_LANE = 128
_MAX_TILE_ROWS = 1024                    # per-step overhead fully amortized past this
_MIN_SPLIT_ROWS = 512                    # only split when each tile keeps >= 256 rows
_VMEM_LIMIT_BYTES = 32 * 1024 * 1024     # raises v5e's 16 MiB scoped default; <= physical on all gens
_VMEM_SOFT_BUDGET = 24 * 1024 * 1024     # tile sizing budget (headroom for compiler internals)


def _round_up(x: int, m: int) -> int:
    return ((x + m - 1) // m) * m


def _pad2(a, rows: int, cols: int, dtype):
    a = jnp.asarray(a, dtype)
    return jnp.pad(a, ((0, rows - a.shape[0]), (0, cols - a.shape[1])))


def decoder_kernel(x_ref, w1_ref, b1_ref, w2_ref, b2_ref, o_ref):
    cdt = w1_ref.dtype
    # Cast x to the compute dtype in VMEM (no extra HBM round-trip in the wrapper).
    x = x_ref[...].astype(cdt)
    h = jnp.dot(x, w1_ref[...], preferred_element_type=jnp.float32)
    h = jnp.maximum(h + b1_ref[...], 0.0)          # bias + ReLU in f32 (safe on v5e VPU)
    y = jnp.dot(h.astype(cdt), w2_ref[...], preferred_element_type=jnp.float32)
    o_ref[...] = (y + b2_ref[...]).astype(o_ref.dtype)   # Decoder: NO final ReLU


def _choose_tile_b(b8: int, per_row_bytes: int, row_budget_bytes: int) -> int:
    """Pick the batch tile: one big step for small/medium B, even #steps for big B."""
    row_cap = max(_SUBLANE,
                  (row_budget_bytes // max(per_row_bytes, 1)) // _SUBLANE * _SUBLANE)
    row_cap = min(row_cap, _MAX_TILE_ROWS)
    if b8 <= row_cap and b8 < _MIN_SPLIT_ROWS:
        return b8                                   # single grid step: no per-step overhead
    steps = max(2, -(-b8 // row_cap))               # must split (VMEM) or worth splitting
    if steps % 2:                                   # even step count -> both v7x TCs busy
        steps += 1
    return max(_SUBLANE, min(row_cap, _round_up(-(-b8 // steps), _SUBLANE)))


def decoder_forward(x, w1, b1, w2, b2, *, tile_b=None,
                    compute_dtype=jnp.bfloat16, out_dtype=jnp.float32):
    """Decoder forward: relu(x @ w1 + b1) @ w2 + b2.

    x : (B, input_dim)                  -- any float dtype, used as-is (no wrapper pad/cast)
    w1: (input_dim, H)                  -- PyTorch linear1.weight transposed
    b1: (H,) or (1, H)
    w2: (H, obs_dim)                    -- PyTorch linear2.weight transposed
    b2: (obs_dim,) or (1, obs_dim)
    """
    B, d_in = x.shape
    assert w1.shape[0] == d_in
    H = w1.shape[1]
    d_out = w2.shape[1]

    # Hidden dim padded to a lane multiple with exact zeros (B-independent, tiny).
    h_p = _round_up(H, _LANE)

    c_bytes = jnp.dtype(compute_dtype).itemsize
    x_bytes = jnp.dtype(x.dtype).itemsize
    o_bytes = jnp.dtype(out_dtype).itemsize

    # Resident weights/biases are single-buffered (pl.Buffered(1)).
    weight_bytes = (d_in * h_p + h_p * d_out) * c_bytes + (h_p + d_out) * 4

    # Per-batch-row VMEM cost: double-buffered x tile + in-kernel cast of x,
    # f32 h + its compute-dtype cast, double-buffered output tile.
    per_row_bytes = (2 * d_in * x_bytes + d_in * c_bytes
                     + h_p * (4 + c_bytes)
                     + 2 * d_out * o_bytes)
    row_budget = max(_VMEM_SOFT_BUDGET - weight_bytes, 1 << 20)

    b8 = _round_up(max(B, 1), _SUBLANE)
    if tile_b is None:
        tile_b = _choose_tile_b(b8, per_row_bytes, row_budget)
    tile_b = max(_SUBLANE, (int(tile_b) // _SUBLANE) * _SUBLANE)

    n_steps = pl.cdiv(B, tile_b)   # ragged last block handled by Pallas masking

    # B-independent operand prep (weights/biases only; x is untouched).
    w1p = _pad2(w1, d_in, h_p, compute_dtype)              # pad H dim with zeros
    b1p = _pad2(jnp.asarray(b1).reshape(1, -1), 1, h_p, jnp.float32)
    w2p = _pad2(w2, h_p, d_out, compute_dtype)             # pad K (hidden) dim with zeros
    b2p = jnp.asarray(b2, jnp.float32).reshape(1, d_out)

    resident = pl.Buffered(buffer_count=1)                 # constant index_map -> 1 buffer

    cost = pl.CostEstimate(
        flops=2 * B * (d_in * h_p + h_p * d_out),
        transcendentals=0,
        bytes_accessed=(B * d_in * x_bytes                 # x in
                        + d_in * h_p * c_bytes             # W1
                        + h_p * d_out * c_bytes            # W2
                        + (h_p + d_out) * 4                # biases
                        + B * d_out * o_bytes),            # out
    )

    return pl.pallas_call(
        decoder_kernel,
        out_shape=jax.ShapeDtypeStruct((B, d_out), out_dtype),
        grid_spec=pltpu.PrefetchScalarGridSpec(
            num_scalar_prefetch=0,
            grid=(n_steps,),
            in_specs=[
                pl.BlockSpec((tile_b, d_in), lambda i: (i, 0)),                       # x tile
                pl.BlockSpec((d_in, h_p), lambda i: (0, 0), pipeline_mode=resident),  # W1
                pl.BlockSpec((1, h_p), lambda i: (0, 0), pipeline_mode=resident),     # b1
                pl.BlockSpec((h_p, d_out), lambda i: (0, 0), pipeline_mode=resident), # W2
                pl.BlockSpec((1, d_out), lambda i: (0, 0), pipeline_mode=resident),   # b2
            ],
            out_specs=pl.BlockSpec((tile_b, d_out), lambda i: (i, 0)),
        ),
        compiler_params=pltpu.CompilerParams(
            dimension_semantics=("parallel",),
            vmem_limit_bytes=_VMEM_LIMIT_BYTES),
        cost_estimate=cost,
    )(x, w1p, b1p, w2p, b2p)


def init_decoder_params(key, input_dim, H, obs_dim):
    """PyTorch nn.Linear-style init (uniform +-1/sqrt(fan_in)); weights stored
    as (in_features, out_features) == PyTorch weight transposed."""
    k1, k2, k3, k4 = jax.random.split(key, 4)
    lim1 = 1.0 / jnp.sqrt(input_dim)
    lim2 = 1.0 / jnp.sqrt(H)
    w1 = jax.random.uniform(k1, (input_dim, H), jnp.float32, -lim1, lim1)
    b1 = jax.random.uniform(k2, (1, H), jnp.float32, -lim1, lim1)
    w2 = jax.random.uniform(k3, (H, obs_dim), jnp.float32, -lim2, lim2)
    b2 = jax.random.uniform(k4, (1, obs_dim), jnp.float32, -lim2, lim2)
    return w1, b1, w2, b2


if __name__ == "__main__":
    # Small shapes consistent with Decoder(input_dim, H, obs_dim)
    B, input_dim, H, obs_dim = 16, 32, 64, 16

    key = jax.random.PRNGKey(0)
    kx, kp = jax.random.split(key)
    x = jax.random.normal(kx, (B, input_dim), jnp.float32)
    w1, b1, w2, b2 = init_decoder_params(kp, input_dim, H, obs_dim)

    # Pure-JAX reference (Decoder: single ReLU, linear output)
    ref = jnp.maximum(x @ w1 + b1, 0.0) @ w2 + b2

    # 1) exactness check with f32 compute
    out_f32 = jax.block_until_ready(
        decoder_forward(x, w1, b1, w2, b2, compute_dtype=jnp.float32))
    assert out_f32.shape == (B, obs_dim)
    assert jnp.allclose(out_f32, ref, atol=1e-5, rtol=1e-5)

    # 2) default bf16-MXU fast path (f32 accumulation), looser tolerance
    out_bf16 = jax.block_until_ready(decoder_forward(x, w1, b1, w2, b2))
    assert out_bf16.shape == (B, obs_dim)
    assert jnp.allclose(out_bf16, ref, atol=5e-2, rtol=5e-2)

    # 3) exercise the ragged / multi-step path (B not a multiple of the tile)
    B2 = 21
    x2 = jax.random.normal(kx, (B2, input_dim), jnp.float32)
    ref2 = jnp.maximum(x2 @ w1 + b1, 0.0) @ w2 + b2
    out2 = jax.block_until_ready(
        decoder_forward(x2, w1, b1, w2, b2, compute_dtype=jnp.float32, tile_b=8))
    assert out2.shape == (B2, obs_dim)
    assert jnp.allclose(out2, ref2, atol=1e-5, rtol=1e-5)

    print("KERNEL_OK")
</pallas_src>

<mosaic_0001>
module attributes {stable_mosaic.version = 11 : i64} {
  func.func @decoder_kernel(%arg0: i32, %arg1: memref<16x32xf32, #tpu.memory_space<vmem>>, %arg2: memref<32x128xf32, #tpu.memory_space<vmem>>, %arg3: memref<1x128xf32, #tpu.memory_space<vmem>>, %arg4: memref<128x16xf32, #tpu.memory_space<vmem>>, %arg5: memref<1x16xf32, #tpu.memory_space<vmem>>, %arg6: memref<16x16xf32, #tpu.memory_space<vmem>>) attributes {dimension_semantics = [#tpu.dimension_semantics<parallel>], iteration_bounds = array<i64: 1>, scalar_prefetch = 0 : i64, scratch_operands = 0 : i64, tpu.core_type = #tpu.core_type<tc>, window_params = [{transform_indices = @transform_0, window_bounds = array<i64: 16, 32>}, {pipeline_mode = #tpu.pipeline_mode<synchronous>, transform_indices = @transform_1, window_bounds = array<i64: 32, 128>}, {pipeline_mode = #tpu.pipeline_mode<synchronous>, transform_indices = @transform_2, window_bounds = array<i64: 1, 128>}, {pipeline_mode = #tpu.pipeline_mode<synchronous>, transform_indices = @transform_3, window_bounds = array<i64: 128, 16>}, {pipeline_mode = #tpu.pipeline_mode<synchronous>, transform_indices = @transform_4, window_bounds = array<i64: 1, 16>}, {transform_indices = @transform_5, window_bounds = array<i64: 16, 16>}]} {
    %c0 = arith.constant 0 : index
    %c0_0 = arith.constant 0 : index
    %0 = vector.load %arg1[%c0, %c0_0] : memref<16x32xf32, #tpu.memory_space<vmem>>, vector<16x32xf32>
    %c0_1 = arith.constant 0 : index
    %c0_2 = arith.constant 0 : index
    %1 = vector.load %arg2[%c0_1, %c0_2] : memref<32x128xf32, #tpu.memory_space<vmem>>, vector<32x128xf32>
    %cst = arith.constant dense<0.000000e+00> : vector<16x128xf32>
    %2 = tpu.matmul %0, %1, %cst {dimension_numbers = #tpu.dot_dimension_numbers<[1], [0], [0], [1], [0, 0, 1, 1], [], []>} : vector<16x32xf32>, vector<32x128xf32>, vector<16x128xf32> -> vector<16x128xf32>
    %c0_3 = arith.constant 0 : index
    %c0_4 = arith.constant 0 : index
    %3 = vector.load %arg3[%c0_3, %c0_4] : memref<1x128xf32, #tpu.memory_space<vmem>>, vector<1x128xf32>
    %4 = vector.broadcast %3 : vector<1x128xf32> to vector<16x128xf32>
    %5 = arith.addf %2, %4 : vector<16x128xf32>
    %cst_5 = arith.constant 0.000000e+00 : f32
    %6 = vector.broadcast %cst_5 : f32 to vector<16x128xf32>
    %7 = arith.maximumf %5, %6 : vector<16x128xf32>
    %c0_6 = arith.constant 0 : index
    %c0_7 = arith.constant 0 : index
    %8 = vector.load %arg4[%c0_6, %c0_7] : memref<128x16xf32, #tpu.memory_space<vmem>>, vector<128x16xf32>
    %cst_8 = arith.constant dense<0.000000e+00> : vector<16x16xf32>
    %9 = tpu.matmul %7, %8, %cst_8 {dimension_numbers = #tpu.dot_dimension_numbers<[1], [0], [0], [1], [0, 0, 1, 1], [], []>} : vector<16x128xf32>, vector<128x16xf32>, vector<16x16xf32> -> vector<16x16xf32>
    %c0_9 = arith.constant 0 : index
    %c0_10 = arith.constant 0 : index
    %10 = vector.load %arg5[%c0_9, %c0_10] : memref<1x16xf32, #tpu.memory_space<vmem>>, vector<1x16xf32>
    %11 = vector.broadcast %10 : vector<1x16xf32> to vector<16x16xf32>
    %12 = arith.addf %9, %11 : vector<16x16xf32>
    %c0_11 = arith.constant 0 : index
    %c0_12 = arith.constant 0 : index
    %13 = vector.load %arg6[%c0_11, %c0_12] : memref<16x16xf32, #tpu.memory_space<vmem>>, vector<16x16xf32>
    tpu.vector_store %arg6[%c0_11, %c0_12], %12 {strides = array<i32>} : memref<16x16xf32, #tpu.memory_space<vmem>>, vector<16x16xf32>,
    return
  }
  func.func @transform_0(%arg0: i32) -> (i32, i32) {
    %c0_i32 = arith.constant 0 : i32
    %c0_i32_0 = arith.constant 0 : i32
    return %arg0, %c0_i32 : i32, i32
  }
  func.func @transform_1(%arg0: i32) -> (i32, i32) {
    %c0_i32 = arith.constant 0 : i32
    %c0_i32_0 = arith.constant 0 : i32
    %c0_i32_1 = arith.constant 0 : i32
    return %c0_i32, %c0_i32_0 : i32, i32
  }
  func.func @transform_2(%arg0: i32) -> (i32, i32) {
    %c0_i32 = arith.constant 0 : i32
    %c0_i32_0 = arith.constant 0 : i32
    %c0_i32_1 = arith.constant 0 : i32
    return %c0_i32, %c0_i32_0 : i32, i32
  }
  func.func @transform_3(%arg0: i32) -> (i32, i32) {
    %c0_i32 = arith.constant 0 : i32
    %c0_i32_0 = arith.constant 0 : i32
    %c0_i32_1 = arith.constant 0 : i32
    return %c0_i32, %c0_i32_0 : i32, i32
  }
  func.func @transform_4(%arg0: i32) -> (i32, i32) {
    %c0_i32 = arith.constant 0 : i32
    %c0_i32_0 = arith.constant 0 : i32
    %c0_i32_1 = arith.constant 0 : i32
    return %c0_i32, %c0_i32_0 : i32, i32
  }
  func.func @transform_5(%arg0: i32) -> (i32, i32) {
    %c0_i32 = arith.constant 0 : i32
    %c0_i32_0 = arith.constant 0 : i32
    return %arg0, %c0_i32 : i32, i32
  }
}

</mosaic_0001>

<bundles_post_ra>
// kernel: tpu_custom_call.1
= control target key start
LH: loop header
LB: loop body
LE: loop exit
PB: predicated region body
PF: predicated region fallthrough
CT: control target
= control target key end

     0   :  { %vm34_vm0 = vcmask 261120   ;;  %s495_s0 = inlined_call_operand.vmem [shape: f32[16,32], index: 0, kind: input, shape index: {}]   ;;  %s496_s1 = inlined_call_operand.vmem [shape: f32[32,128], index: 1, kind: input, shape index: {}]   ;;  %s497_s2 = inlined_call_operand.vmem [shape: f32[1,128], index: 2, kind: input, shape index: {}]   ;;  %s498_s3 = inlined_call_operand.vmem [shape: f32[128,16], index: 3, kind: input, shape index: {}]   ;;  %s499_s4 = inlined_call_operand.vmem [shape: f32[1,16], index: 4, kind: input, shape index: {}]   ;;  %s500_s5 = inlined_call_operand.hbm [shape: f32[16,16], index: 5, kind: output, shape index: {}]  }
   0x1   :  { %v23_v0 = vld [vmem:[%s496_s1] sm:$0xff]  ;;  %v24_v1 = vld [vmem:[%s496_s1 + $0x8] sm:$0xff]  ;;  %v25_v2 = vld [vmem:[%s496_s1 + $0x10] sm:$0xff] }
   0x2   :  { %v309_v3 = vpack.c.bf16 %v24_v1, %v23_v0  ;;  %v26_v4 = vld [vmem:[%s496_s1 + $0x18] sm:$0xff]  ;;  %v21_v5 = vld [vmem:[%s495_s0] sm:$0xff]  ;;  %v119_v8 = vld [vmem:[%s498_s3 + $0x8] sm:$0xff] }
   0x3   :  { %v313_v6 = vpack.c.bf16 %v26_v4, %v25_v2  ;;  %271 = vmatprep.mubr.msk.f32.mxu0 %vm34_vm0, %v21_v5  ;;  %v118_v7 = vld [vmem:[%s498_s3] sm:$0xff]  ;;  %v120_v9 = vld [vmem:[%s498_s3 + $0x10] sm:$0xff]  ;;  %v121_v11 = vld [vmem:[%s498_s3 + $0x18] sm:$0xff] }
   0x4   :  { %310 = vmatprep.subr.bf16.mxu0 %v309_v3  ;;  %v317_v10 = vpack.c.bf16 %v119_v8, %v118_v7  ;;  %v321_v12 = vpack.c.bf16 %v121_v11, %v120_v9  ;;  %v122_v13 = vld [vmem:[%s498_s3 + $0x20] sm:$0xff]  ;;  %v123_v14 = vld [vmem:[%s498_s3 + $0x28] sm:$0xff] }
   0x5   :  { %312 = vmatpush3.bf16.msra.mxu0 %v309_v3 }
   0x6   :  { %314 = vmatprep.subr.bf16.mxu0 %v313_v6  ;;  %318 = vmatprep.subr.bf16.mxu1 %v317_v10 }
   0x7   :  { %320 = vmatpush3.bf16.msra.mxu1 %v317_v10 }
   0x8   :  { %10 = vsyncpa [#allocation3], 0  ;;  %322 = vmatprep.subr.bf16.mxu1 %v321_v12  ;;  %v325_v15 = vpack.c.bf16 %v123_v14, %v122_v13  ;;  %v22_v16 = vld [vmem:[%s495_s0 + $0x8] sm:$0xff]  ;;  %v124_v17 = vld [vmem:[%s498_s3 + $0x30] sm:$0xff]  ;;  %vm216_vm1 = vcmask 130048  }
   0x9   :  { %316 = vmatpush3.bf16.msra.mxu0 %v313_v6  ;;  %v125_v18 = vld [vmem:[%s498_s3 + $0x38] sm:$0xff]  ;;  %v126_v20 = vld [vmem:[%s498_s3 + $0x40] sm:$0xff]  ;;  %v127_v21 = vld [vmem:[%s498_s3 + $0x48] sm:$0xff] }
   0xa   :  { %v329_v19 = vpack.c.bf16 %v125_v18, %v124_v17  ;;  %v333_v22 = vpack.c.bf16 %v127_v21, %v126_v20  ;;  %v128_v23 = vld [vmem:[%s498_s3 + $0x50] sm:$0xff]  ;;  %v129_v24 = vld [vmem:[%s498_s3 + $0x58] sm:$0xff]  ;;  %v130_v26 = vld [vmem:[%s498_s3 + $0x60] sm:$0xff] }
   0xb   :  { %324 = vmatpush3.bf16.msra.mxu1 %v321_v12  ;;  %v337_v25 = vpack.c.bf16 %v129_v24, %v128_v23  ;;  %v131_v27 = vld [vmem:[%s498_s3 + $0x68] sm:$0xff]  ;;  %v132_v29 = vld [vmem:[%s498_s3 + $0x70] sm:$0xff]  ;;  %v133_v30 = vld [vmem:[%s498_s3 + $0x78] sm:$0xff]  ;;  %s376_s3 = smov [#allocation2]  }
   0xc   :  { %272 = vmatmul.mubr.msk.f32.vlgmr.msra.gmra.mrb[0].mxu0 %vm34_vm0, %v22_v16  ;;  %326 = vmatprep.subr.bf16.mxu1 %v325_v15  ;;  %v341_v28 = vpack.c.bf16 %v131_v27, %v130_v26  ;;  %v345_v31 = vpack.c.bf16 %v133_v30, %v132_v29  ;;  %v235_v32 = vld [vmem:[%s497_s2] ss:$0 sm:$0xff]  ;;  %s224_s13 = sshll.u32 %s376_s3, 4  ;;  %s225_s13 = int_to_ptr.vmem [resolvable:$true] %s224_s13 }
   0xd   :  { %v238_v39 = vld [vmem:[%s499_s4] ss:$0 sm:$0xff]  ;;  %s352_s2 = scalar_lea.vmem %s225_s13, 256  ;;  %p357_p1 = scmp.lt.s32.totalorder %s225_s13, %s225_s13 }
   0xe   :  { %p353_p0 = scmp.ne.s32.totalorder %s225_s13, %s352_s2  ;;  %p358_p2 = scmp.lt.s32.totalorder %s352_s2, %s352_s2 }
   0xf   :  { %328 = vmatpush3.bf16.msra.mxu1 %v325_v15 }
  0x10   :  { %330 = vmatprep.subr.bf16.mxu1 %v329_v19  ;;  %p359_p3 = por %p358_p2, %p357_p1 }
  0x12   :  { %p360_p4 = pnand %p359_p3, %p353_p0 }
  0x13   :  { %332 = vmatpush3.bf16.msra.mxu1 %v329_v19 }
  0x14   :  { %334 = vmatprep.subr.bf16.mxu1 %v333_v22 }
  0x17   :  { %336 = vmatpush3.bf16.msra.mxu1 %v333_v22 }
  0x18   :  { %338 = vmatprep.subr.bf16.mxu1 %v337_v25 }
  0x1b   :  { %340 = vmatpush3.bf16.msra.mxu1 %v337_v25 }
  0x1c   :  { %342 = vmatprep.subr.bf16.mxu1 %v341_v28 }
  0x1f   :  { %344 = vmatpush3.bf16.msra.mxu1 %v341_v28 }
  0x20   :  { %346 = vmatprep.subr.bf16.mxu1 %v345_v31 }
  0x23   :  { %348 = vmatpush3.bf16.msra.mxu1 %v345_v31 }
  0xdf   :  { %v273_v33 = vpop.f32.mrb[0].mxu0 }
  0xe0   :  { %v113_v34 = vadd.f32 %v273_v33, %v235_v32  ;;  %v107_v35 = vpop.f32.mrb[1].mxu0 }
  0xe1   :  { %v108_v36 = vadd.f32 %v235_v32, %v107_v35 }
  0xe2   :  { %v117_v38 = vmax.f32 %v113_v34, 0.0 }
  0xe3   :  { %v116_v37 = vmax.f32 %v108_v36, 0.0 }
  0xe5   :  { %306 = vmatprep.mubr.f32.mxu1 %v116_v37 }
  0xe6   :  { %307 = vmatmul.mubr.f32.vlgmr.msra.gmra.mrb[0].mxu1 %v117_v38 }
 0x1b9   :  { %v308_v40 = vpop.f32.mrb[0].mxu1 }
 0x1ba   :  { %v213_v41 = vadd.f32 %v308_v40, %v238_v39  ;;  %v207_v42 = vpop.f32.mrb[1].mxu1 }
 0x1bb   :  { %v208_v43 = vadd.f32 %v238_v39, %v207_v42 }
 0x1bc   :  { %218 = vst.msk [vmem:[#allocation2 + $0x8] sm:$0xff] %vm216_vm1, %v213_v41 }
 0x1bd   :  { %217 = vst.msk [vmem:[#allocation2] sm:$0xff] %vm216_vm1, %v208_v43 }
 0x1be   :  { %363 = shalt.err (!%p360_p4)
}
 0x1bf   :  { %s364_s4 = scalar_lea.hbm %s500_s5, 256 }
 0x1c0   :  { %p365_p5 = scmp.ne.s32.totalorder %s500_s5, %s364_s4  ;;  %p368_p6 = scmp.lt.u32.totalorder %s364_s4, %s500_s5 }
 0x1c2   :  { %p370_p7 = pnand %p368_p6, %p365_p5 }
 0x1c4   :  { %373 = shalt.err (!%p370_p7)
}
 0x1c5   :  { %s377_s20 = smov 128   ;;  %s378_s21 = smov 8  }
 0x1c6   :  { %230 = dma.vmem_to_hbm [thread:$0]  %s225_s13, 256, %s500_s5, [#allocation3], %s377_s20, %s377_s20, %s378_s21  }
 0x1c7   :  { %374 = dma.done.wait [#allocation3], 256  }
 0x1c8   :  { %375 = vsyncadd [#allocation3], 4294967040 }
 0x1c9   :  { %234 = vsyncpa [#allocation3], 1 }

</bundles_post_ra>
